<compile_context>
chip_gen: v5e
topology: v5e:2x2
jax: 0.10.0
libtpu: 0.0.40
codegen_flags: <defaults>
</compile_context>

<pallas_src>
import functools

import jax
import jax.numpy as jnp
from jax.experimental import pallas as pl
from jax.experimental.pallas import tpu as pltpu

NUM_CLASS = 32

TEMPLATE = {
    '01': [1, 2, 3, 4, 5, 6, 7, 8, 9, 10, 11, 12, 13, 14],
    '01_2': [1, 3, 4, 5, 6, 7, 11, 14],
    '02': [1, 3, 4, 5, 6, 7, 11, 14],
    '03': [6],
    '04': [6, 27],
    '05': [2, 3, 26, 32],
    '06': [1, 2, 3, 4, 6, 7, 11, 16, 17],
    '07': [6, 1, 3, 2, 7, 4, 5, 11, 14, 18, 19, 12, 13, 20, 21, 23, 24],
    '08': [6, 2, 3, 1, 11],
    '09': [1, 2, 3, 4, 5, 6, 7, 8, 9, 11, 12, 13, 14, 21, 22],
    '12': [6, 21, 16, 17, 2, 3],
    '13': [6, 2, 3, 1, 11, 8, 9, 7, 4, 5, 12, 13, 25],
    '10_03': [6, 27],
    '10_06': [30],
    '10_07': [11, 28],
    '10_08': [15, 29],
    '10_09': [1],
    '10_10': [31],
    '14': [1, 2, 3, 4, 6, 7, 11],
    '21': [1, 2, 3, 6, 11],
}

_LANES = 128                    # vreg lane width
_DEFAULT_TILE_CAP = 4096        # sublanes per spatial block (4096*128*4B = 2 MiB)
_SMALL_PATH_MAX_SUBLANES = 128  # per-pair spatial rows below which we pack pairs
_PAIRS_PER_BLOCK = 8            # pairs per grid step in the small-image path
_VMEM_LIMIT_CAP = 32 * 1024 * 1024


def _template_key(name: str) -> str:
    """Replicates the string-parsing logic in DiceLoss.forward (Python glue)."""
    dataset_index = int(name[0:2])
    if dataset_index == 10:
        return name[0:2] + '_' + name[17:19]
    elif dataset_index == 1:
        if int(name[-2:]) >= 60:
            return '01_2'
        return '01'
    return name[0:2]


def _vmem_budget_bytes() -> int:
    """Generation-aware VMEM limit (v7x has 64 MiB physical vs 128 on v5e/v6e)."""
    try:
        cap = pltpu.get_tpu_info().vmem_capacity_bytes
    except Exception:
        cap = 128 * 1024 * 1024
    return min(_VMEM_LIMIT_CAP, cap // 2)


# ---------------------------------------------------------------------------
# Large-image path: one (batch, organ) pair per grid row, spatial axis tiled,
# channel gathered straight from HBM via scalar-prefetch index_map.
# ---------------------------------------------------------------------------
def _dice_pair_kernel(idx_ref, pred_ref, targ_ref, loss_ref, num_acc, den_acc,
                      *, smooth, hw):
    del idx_ref  # consumed by the index_maps only
    tile_s = pred_ref.shape[1]
    s = pl.program_id(1)

    # In-kernel tail mask: covers both the minimal lane pad and the OOB region
    # of a partial last block (no wrapper-side full pad, no sigmoid underflow).
    row = jax.lax.broadcasted_iota(jnp.int32, (tile_s, _LANES), 0)
    col = jax.lax.broadcasted_iota(jnp.int32, (tile_s, _LANES), 1)
    elem = s * (tile_s * _LANES) + row * _LANES + col
    mask = elem < hw

    x = pred_ref[0].astype(jnp.float32)
    p = 0.5 * (jnp.tanh(0.5 * x) + 1.0)          # sigmoid, single EUP push
    t = targ_ref[0].astype(jnp.float32)
    p = jnp.where(mask, p, 0.0)
    t = jnp.where(mask, t, 0.0)
    prod = p * t
    both = p + t                                  # fused denominator sum(p)+sum(t)

    if tile_s % 8 == 0:
        # Lane/sublane-resident accumulation: per-step work is pure VPU vreg
        # adds; the single cross-lane XLU reduce happens only in the finalize.
        num_part = prod.reshape(tile_s // 8, 8, _LANES).sum(axis=0)
        den_part = both.reshape(tile_s // 8, 8, _LANES).sum(axis=0)

        @pl.when(s == 0)
        def _():
            num_acc[...] = jnp.zeros_like(num_acc)
            den_acc[...] = jnp.zeros_like(den_acc)

        num_acc[...] += num_part
        den_acc[...] += den_part

        @pl.when(s == pl.num_programs(1) - 1)
        def _():
            num = jnp.sum(num_acc[...]) + smooth
            den = jnp.sum(den_acc[...]) + smooth
            loss_ref[...] = jnp.full(loss_ref.shape, 1.0 - 2.0 * num / den,
                                     dtype=jnp.float32)
    else:
        # tile_s == s_total (single spatial block per pair): reduce directly.
        num = jnp.sum(prod) + smooth
        den = jnp.sum(both) + smooth
        loss_ref[...] = jnp.full(loss_ref.shape, 1.0 - 2.0 * num / den,
                                 dtype=jnp.float32)


def _dice_large_path(pred, targ, flat_idx, hw, smooth, vmem_limit,
                     max_tile_sublanes):
    n_pairs = len(flat_idx)
    s_total = pred.shape[1]
    idx = jnp.asarray(flat_idx, dtype=jnp.int32)

    # Double-buffered input blocks must fit comfortably inside the VMEM budget
    # (leave ~3/4 of the limit for kernel temporaries).
    bytes_per_row = _LANES * (pred.dtype.itemsize + targ.dtype.itemsize)
    cap = (vmem_limit // 4) // (2 * bytes_per_row)
    cap = max(8, (cap // 32) * 32)        # multiple of 32: int8 sublane packing
    cap = min(cap, _DEFAULT_TILE_CAP)
    if max_tile_sublanes is not None:
        cap = min(cap, max(8, (max_tile_sublanes // 8) * 8))

    tile_s = s_total if s_total <= cap else cap
    n_s_blocks = pl.cdiv(s_total, tile_s)

    tile_spec = pl.BlockSpec((1, tile_s, _LANES),
                             lambda i, s, idx_ref: (idx_ref[i], s, 0))

    out = pl.pallas_call(
        functools.partial(_dice_pair_kernel, smooth=smooth, hw=hw),
        out_shape=jax.ShapeDtypeStruct((n_pairs, 8, _LANES), jnp.float32),
        grid_spec=pltpu.PrefetchScalarGridSpec(
            num_scalar_prefetch=1,
            grid=(n_pairs, n_s_blocks),
            in_specs=[tile_spec, tile_spec],
            out_specs=pl.BlockSpec((1, 8, _LANES),
                                   lambda i, s, idx_ref: (i, 0, 0)),
            scratch_shapes=[pltpu.VMEM((8, _LANES), jnp.float32),
                            pltpu.VMEM((8, _LANES), jnp.float32)],
        ),
        compiler_params=pltpu.CompilerParams(
            # Pair axis has independent outputs; spatial axis carries the
            # VMEM accumulators.
            # TODO(synk): on v7x use pltpu.CORE_PARALLEL (or pl.core_map) with a
            # balanced pair/spatial split to actually shard the 2 TensorCores.
            dimension_semantics=("parallel", "arbitrary"),
            vmem_limit_bytes=vmem_limit),
    )(idx, pred, targ)
    return out[:, 0, 0]


# ---------------------------------------------------------------------------
# Small-image path: channels pre-gathered in the wrapper (tiny copy), many
# pairs per grid step so the ~600-cycle step overhead is amortized.
# ---------------------------------------------------------------------------
def _dice_packed_kernel(pred_ref, targ_ref, loss_ref, *, smooth, hw):
    pt, s_tot, lanes = pred_ref.shape
    row = jax.lax.broadcasted_iota(jnp.int32, (pt, s_tot, lanes), 1)
    col = jax.lax.broadcasted_iota(jnp.int32, (pt, s_tot, lanes), 2)
    mask = (row * lanes + col) < hw

    x = pred_ref[...].astype(jnp.float32)
    p = 0.5 * (jnp.tanh(0.5 * x) + 1.0)          # sigmoid, single EUP push
    t = targ_ref[...].astype(jnp.float32)
    p = jnp.where(mask, p, 0.0)
    t = jnp.where(mask, t, 0.0)

    num = jnp.sum(jnp.sum(p * t, axis=2), axis=1, keepdims=True) + smooth  # (pt,1)
    den = jnp.sum(jnp.sum(p + t, axis=2), axis=1, keepdims=True) + smooth
    loss = 1.0 - 2.0 * num / den                                           # (pt,1)
    loss_ref[...] = jnp.broadcast_to(loss, loss_ref.shape)


def _dice_small_path(pred, targ, flat_idx, hw, smooth, vmem_limit):
    n_pairs = len(flat_idx)
    s_total = pred.shape[1]
    p_tile = _PAIRS_PER_BLOCK
    n_pad = pl.cdiv(n_pairs, p_tile) * p_tile
    idx = jnp.asarray(flat_idx + [flat_idx[0]] * (n_pad - n_pairs), jnp.int32)

    gp = jnp.take(pred, idx, axis=0)   # (n_pad, s_total, 128) -- tiny gather
    gt = jnp.take(targ, idx, axis=0)

    out = pl.pallas_call(
        functools.partial(_dice_packed_kernel, smooth=smooth, hw=hw),
        out_shape=jax.ShapeDtypeStruct((n_pad, _LANES), jnp.float32),
        grid=(n_pad // p_tile,),
        in_specs=[pl.BlockSpec((p_tile, s_total, _LANES), lambda i: (i, 0, 0)),
                  pl.BlockSpec((p_tile, s_total, _LANES), lambda i: (i, 0, 0))],
        out_specs=pl.BlockSpec((p_tile, _LANES), lambda i: (i, 0)),
        compiler_params=pltpu.CompilerParams(
            dimension_semantics=("parallel",),
            vmem_limit_bytes=vmem_limit),
    )(gp, gt)
    return out[:n_pairs, 0]


# ---------------------------------------------------------------------------
# Wrapper (DiceLoss.forward)
# ---------------------------------------------------------------------------
def dice_loss(predict, target, name, template, *, smooth=1e-5,
              max_tile_sublanes=None, small_path_max_sublanes=None):
    """Pallas implementation of DiceLoss.forward.

    predict: (B, C, H, W) logits (f32 or bf16); target: (B, C, H, W) binary
    mask (f32 / int8 / ...). Both are cast to f32 inside the kernel, so bf16
    predict + int8 target minimizes HBM traffic.
    """
    B, C, H, W = predict.shape
    assert target.shape == predict.shape

    # Static (batch, organ) pair list (Python-level in the PyTorch module too).
    flat_idx = []
    for b in range(B):
        for organ in template[_template_key(name[b])]:
            flat_idx.append(b * C + (organ - 1))
    n_pairs = len(flat_idx)
    if n_pairs == 0:
        raise ValueError("DiceLoss: template produced no (batch, organ) pairs")

    # Lane-dense fold of the spatial dims onto (sublane, lane) = (S, 128).
    # Only a minimal pad to the next lane multiple (values never matter: the
    # kernel masks element index >= hw).
    hw = H * W
    s_total = pl.cdiv(hw, _LANES)
    hw_lanes = s_total * _LANES

    pred = predict.reshape(B * C, hw)
    targ = target.reshape(B * C, hw)
    if hw_lanes != hw:
        pred = jnp.pad(pred, ((0, 0), (0, hw_lanes - hw)))
        targ = jnp.pad(targ, ((0, 0), (0, hw_lanes - hw)))
    pred = pred.reshape(B * C, s_total, _LANES)
    targ = targ.reshape(B * C, s_total, _LANES)

    vmem_limit = _vmem_budget_bytes()
    small_cut = (_SMALL_PATH_MAX_SUBLANES if small_path_max_sublanes is None
                 else small_path_max_sublanes)

    if s_total <= small_cut:
        losses = _dice_small_path(pred, targ, flat_idx, hw, smooth, vmem_limit)
    else:
        losses = _dice_large_path(pred, targ, flat_idx, hw, smooth, vmem_limit,
                                  max_tile_sublanes)

    # total_loss.sum() / total_loss.shape[0]
    return jnp.sum(losses) / n_pairs


def _reference(predict, target, name, template, smooth=1e-5):
    """Pure-JAX reference mirroring the PyTorch forward (for sanity)."""
    p = jax.nn.sigmoid(predict.astype(jnp.float32))
    t = target.astype(jnp.float32)
    losses = []
    for b in range(predict.shape[0]):
        for organ in template[_template_key(name[b])]:
            pp = p[b, organ - 1].reshape(-1)
            tt = t[b, organ - 1].reshape(-1)
            num = jnp.sum(pp * tt) + smooth
            den = jnp.sum(pp) + jnp.sum(tt) + smooth
            losses.append(1.0 - 2.0 * num / den)
    losses = jnp.stack(losses)
    return jnp.sum(losses) / losses.shape[0]


if __name__ == "__main__":
    key = jax.random.PRNGKey(0)
    B, C = 2, NUM_CLASS
    # Dataset names -> template keys '03' and '05' (5 (batch, organ) pairs).
    names = ["03_case_0001_07", "05_case_0042_13"]

    k1, k2, k3, k4 = jax.random.split(key, 4)

    # --- small-image path (packed pairs), bf16 logits + int8 mask -----------
    predict = jax.random.normal(k1, (B, C, 16, 16), dtype=jnp.float32)
    predict = predict.astype(jnp.bfloat16)     # 2 B/elem pred traffic
    target = (jax.random.uniform(k2, (B, C, 16, 16)) > 0.5).astype(jnp.int8)
    out = jax.block_until_ready(dice_loss(predict, target, names, TEMPLATE))
    ref = _reference(predict, target, names, TEMPLATE)
    assert jnp.allclose(out, ref, atol=1e-4, rtol=1e-4), (out, ref)

    # --- large-image (tiled, accumulator) path, forced at small shape -------
    # 40x40 -> hw=1600 = 12.5*128: exercises the minimal lane pad and the
    # in-kernel tail mask of a partial last spatial block.
    predict2 = jax.random.normal(k3, (B, C, 40, 40), dtype=jnp.float32)
    target2 = (jax.random.uniform(k4, (B, C, 40, 40)) > 0.5).astype(jnp.int8)
    out2 = jax.block_until_ready(
        dice_loss(predict2, target2, names, TEMPLATE,
                  small_path_max_sublanes=0, max_tile_sublanes=8))
    ref2 = _reference(predict2, target2, names, TEMPLATE)
    assert jnp.allclose(out2, ref2, atol=1e-4, rtol=1e-4), (out2, ref2)

    # --- large path, single spatial block per pair (direct-reduce branch) ---
    out3 = jax.block_until_ready(
        dice_loss(predict2, target2, names, TEMPLATE,
                  small_path_max_sublanes=0))
    assert jnp.allclose(out3, ref2, atol=1e-4, rtol=1e-4), (out3, ref2)

    print("KERNEL_OK")
</pallas_src>

<mosaic_0001>
module attributes {stable_mosaic.version = 11 : i64} {
  func.func @_dice_packed_kernel(%arg0: i32, %arg1: memref<8x2x128xbf16, #tpu.memory_space<vmem>>, %arg2: memref<8x2x128xi8, #tpu.memory_space<vmem>>, %arg3: memref<8x128xf32, #tpu.memory_space<vmem>>) attributes {dimension_semantics = [#tpu.dimension_semantics<parallel>], iteration_bounds = array<i64: 1>, scalar_prefetch = 0 : i64, scratch_operands = 0 : i64, tpu.core_type = #tpu.core_type<tc>, window_params = [{transform_indices = @transform_0, window_bounds = array<i64: 8, 2, 128>}, {transform_indices = @transform_1, window_bounds = array<i64: 8, 2, 128>}, {transform_indices = @transform_2, window_bounds = array<i64: 8, 128>}]} {
    %0 = tpu.iota {dimensions = array<i32: 1>} : vector<8x2x128xi32>
    %1 = tpu.iota {dimensions = array<i32: 2>} : vector<8x2x128xi32>
    %c128_i32 = arith.constant 128 : i32
    %2 = vector.broadcast %c128_i32 : i32 to vector<8x2x128xi32>
    %3 = arith.muli %0, %2 : vector<8x2x128xi32>
    %4 = arith.addi %3, %1 : vector<8x2x128xi32>
    %c256_i32 = arith.constant 256 : i32
    %5 = vector.broadcast %c256_i32 : i32 to vector<8x2x128xi32>
    %6 = arith.cmpi slt, %4, %5 : vector<8x2x128xi32>
    %c0 = arith.constant 0 : index
    %c0_0 = arith.constant 0 : index
    %c0_1 = arith.constant 0 : index
    %7 = vector.load %arg1[%c0, %c0_0, %c0_1] : memref<8x2x128xbf16, #tpu.memory_space<vmem>>, vector<8x2x128xbf16>
    %8 = arith.extf %7 : vector<8x2x128xbf16> to vector<8x2x128xf32>
    %cst = arith.constant 5.000000e-01 : f32
    %9 = vector.broadcast %cst : f32 to vector<8x2x128xf32>
    %10 = arith.mulf %9, %8 : vector<8x2x128xf32>
    %11 = math.tanh %10 : vector<8x2x128xf32>
    %cst_2 = arith.constant 1.000000e+00 : f32
    %12 = vector.broadcast %cst_2 : f32 to vector<8x2x128xf32>
    %13 = arith.addf %11, %12 : vector<8x2x128xf32>
    %cst_3 = arith.constant 5.000000e-01 : f32
    %14 = vector.broadcast %cst_3 : f32 to vector<8x2x128xf32>
    %15 = arith.mulf %14, %13 : vector<8x2x128xf32>
    %c0_4 = arith.constant 0 : index
    %c0_5 = arith.constant 0 : index
    %c0_6 = arith.constant 0 : index
    %16 = vector.load %arg2[%c0_4, %c0_5, %c0_6] : memref<8x2x128xi8, #tpu.memory_space<vmem>>, vector<8x2x128xi8>
    %17 = arith.sitofp %16 : vector<8x2x128xi8> to vector<8x2x128xf32>
    %cst_7 = arith.constant 0.000000e+00 : f32
    %18 = vector.broadcast %cst_7 : f32 to vector<8x2x128xf32>
    %19 = arith.select %6, %15, %18 : vector<8x2x128xi1>, vector<8x2x128xf32>
    %cst_8 = arith.constant 0.000000e+00 : f32
    %20 = vector.broadcast %cst_8 : f32 to vector<8x2x128xf32>
    %21 = arith.select %6, %17, %20 : vector<8x2x128xi1>, vector<8x2x128xf32>
    %22 = arith.mulf %19, %21 : vector<8x2x128xf32>
    %cst_9 = arith.constant dense<0.000000e+00> : vector<8x2xf32>
    %23 = vector.multi_reduction <add>, %22, %cst_9 [2] : vector<8x2x128xf32> to vector<8x2xf32>
    %cst_10 = arith.constant dense<0.000000e+00> : vector<8xf32>
    %24 = vector.multi_reduction <add>, %23, %cst_10 [1] : vector<8x2xf32> to vector<8xf32>
    %25 = vector.shape_cast %24 : vector<8xf32> to vector<8x1xf32>
    %cst_11 = arith.constant 9.99999974E-6 : f32
    %26 = vector.broadcast %cst_11 : f32 to vector<8x1xf32>
    %27 = arith.addf %25, %26 : vector<8x1xf32>
    %28 = arith.addf %19, %21 : vector<8x2x128xf32>
    %cst_12 = arith.constant dense<0.000000e+00> : vector<8x2xf32>
    %29 = vector.multi_reduction <add>, %28, %cst_12 [2] : vector<8x2x128xf32> to vector<8x2xf32>
    %cst_13 = arith.constant dense<0.000000e+00> : vector<8xf32>
    %30 = vector.multi_reduction <add>, %29, %cst_13 [1] : vector<8x2xf32> to vector<8xf32>
    %31 = vector.shape_cast %30 : vector<8xf32> to vector<8x1xf32>
    %cst_14 = arith.constant 9.99999974E-6 : f32
    %32 = vector.broadcast %cst_14 : f32 to vector<8x1xf32>
    %33 = arith.addf %31, %32 : vector<8x1xf32>
    %cst_15 = arith.constant 2.000000e+00 : f32
    %34 = vector.broadcast %cst_15 : f32 to vector<8x1xf32>
    %35 = arith.mulf %34, %27 : vector<8x1xf32>
    %36 = arith.divf %35, %33 : vector<8x1xf32>
    %cst_16 = arith.constant 1.000000e+00 : f32
    %37 = vector.broadcast %cst_16 : f32 to vector<8x1xf32>
    %38 = arith.subf %37, %36 : vector<8x1xf32>
    %39 = vector.shape_cast %38 : vector<8x1xf32> to vector<8x1xf32>
    %40 = vector.broadcast %39 : vector<8x1xf32> to vector<8x128xf32>
    %c0_17 = arith.constant 0 : index
    %c0_18 = arith.constant 0 : index
    %41 = vector.load %arg3[%c0_17, %c0_18] : memref<8x128xf32, #tpu.memory_space<vmem>>, vector<8x128xf32>
    tpu.vector_store %arg3[%c0_17, %c0_18], %40 {strides = array<i32>} : memref<8x128xf32, #tpu.memory_space<vmem>>, vector<8x128xf32>,
    return
  }
  func.func @transform_0(%arg0: i32) -> (i32, i32, i32) {
    %c0_i32 = arith.constant 0 : i32
    %c0_i32_0 = arith.constant 0 : i32
    %c0_i32_1 = arith.constant 0 : i32
    return %arg0, %c0_i32, %c0_i32_0 : i32, i32, i32
  }
  func.func @transform_1(%arg0: i32) -> (i32, i32, i32) {
    %c0_i32 = arith.constant 0 : i32
    %c0_i32_0 = arith.constant 0 : i32
    %c0_i32_1 = arith.constant 0 : i32
    return %arg0, %c0_i32, %c0_i32_0 : i32, i32, i32
  }
  func.func @transform_2(%arg0: i32) -> (i32, i32) {
    %c0_i32 = arith.constant 0 : i32
    %c0_i32_0 = arith.constant 0 : i32
    return %arg0, %c0_i32 : i32, i32
  }
}

</mosaic_0001>

<bundles_post_ra>
// kernel: tpu_custom_call.1
= control target key start
LH: loop header
LB: loop body
LE: loop exit
PB: predicated region body
PF: predicated region fallthrough
CT: control target
= control target key end

     0   :  { %v12_v0 = vlaneseq  ;;  %s484_s0 = inlined_call_operand.vmem [shape: bf16[8,2,128], index: 0, kind: input, shape index: {}]   ;;  %s485_s1 = inlined_call_operand.vmem [shape: s8[8,2,128], index: 1, kind: input, shape index: {}]   ;;  %s486_s2 = inlined_call_operand.hbm [shape: f32[8,128], index: 2, kind: output, shape index: {}]  }
   0x1   :  { %v19_v1 = vld [vmem:[%s484_s0] sm:$0x1]  ;;  %v21_v4 = vld [vmem:[%s484_s0 + $0x2] sm:$0x1]  ;;  %v23_v6 = vld [vmem:[%s484_s0 + $0x4] sm:$0x1] }
   0x2   :  { %v67_v2 = vld [vmem:[%s485_s1] sm:$0x1]  ;;  %v27_v3 = vunpack.c.l.bf16 %v19_v1  ;;  %v69_v5 = vld [vmem:[%s485_s1 + $0x2] sm:$0x1]  ;;  %v13_v7 = vshrl.u32 %v12_v0, 7  ;;  %v346_v8 = vand.u32 127, %v12_v0  ;;  %v29_v9 = vunpack.c.l.bf16 %v21_v4 }
   0x3   :  { %v71_v10 = vld [vmem:[%s485_s1 + $0x4] sm:$0x1]  ;;  %v20_v11 = vld [vmem:[%s484_s0 + $0x1] sm:$0x1]  ;;  %v75_v13 = vunpack.c.0.s8 %v67_v2  ;;  %v31_v14 = vunpack.c.l.bf16 %v23_v6  ;;  %v22_v16 = vld [vmem:[%s484_s0 + $0x3] sm:$0x1]  ;;  %v77_v19 = vunpack.c.0.s8 %v69_v5 }
   0x4   :  { %v35_v12 = vmul.f32 0.5, %v27_v3  ;;  %v68_v15 = vld [vmem:[%s485_s1 + $0x1] sm:$0x1]  ;;  %v16_v17 = vmul.u32 128, %v13_v7  ;;  %v37_v18 = vmul.f32 0.5, %v29_v9  ;;  %v28_v20 = vunpack.c.l.bf16 %v20_v11 }
   0x5   :  { %v24_v21 = vld [vmem:[%s484_s0 + $0x5] sm:$0x1]  ;;  %v39_v22 = vmul.f32 0.5, %v31_v14  ;;  %v79_v23 = vunpack.c.0.s8 %v71_v10  ;;  %v76_v24 = vunpack.c.0.s8 %v68_v15  ;;  %v30_v27 = vunpack.c.l.bf16 %v22_v16  ;;  %v70_v28 = vld [vmem:[%s485_s1 + $0x3] sm:$0x1] }
   0x6   :  { %271 = vtanh.f32 %v35_v12  ;;  %v364_v25 = vadd.s32 %v16_v17, %v346_v8  ;;  %v36_v26 = vmul.f32 0.5, %v28_v20  ;;  %v32_v29 = vunpack.c.l.bf16 %v24_v21  ;;  %v72_v30 = vld [vmem:[%s485_s1 + $0x5] sm:$0x1] }
   0x7   :  { %273 = vtanh.f32 %v37_v18 }
   0x8   :  { %275 = vtanh.f32 %v39_v22 }
   0x9   :  { %7 = vsyncpa [#allocation3], 0  ;;  %v83_v31 = vcvt.s32.f32 %v75_v13  ;;  %v85_v32 = vcvt.s32.f32 %v77_v19  ;;  %277 = vtanh.f32 %v36_v26  ;;  %v38_v33 = vmul.f32 0.5, %v30_v27  ;;  %v25_v34 = vld [vmem:[%s484_s0 + $0x6] sm:$0x1]  ;;  %s261_s15 = sshll.u32 %s486_s2, 4  ;;  %s262_s15 = int_to_ptr.hbm [resolvable:$true] %s261_s15 }
   0xa   :  { %v26_v35 = vld [vmem:[%s484_s0 + $0x7] sm:$0x1]  ;;  %vm18_vm0 = vcmp.lt.s32.totalorder %v364_v25, 256  ;;  %v87_v36 = vcvt.s32.f32 %v79_v23  ;;  %v84_v37 = vcvt.s32.f32 %v76_v24  ;;  %v78_v38 = vunpack.c.0.s8 %v70_v28  ;;  %v73_v52 = vld [vmem:[%s485_s1 + $0x6] sm:$0x1] }
   0xb   :  { %279 = vtanh.f32 %v38_v33  ;;  %v40_v39 = vmul.f32 0.5, %v32_v29  ;;  %vm115_vm1 = vcmask 1041408   ;;  %v80_v41 = vunpack.c.0.s8 %v72_v30  ;;  %v74_v62 = vld [vmem:[%s485_s1 + $0x7] sm:$0x1]  ;;  %s315_s1 = smov [#allocation2]  }
   0xc   :  { %v272_v40 = vpop.eup %271  ;;  %v33_v42 = vunpack.c.l.bf16 %v25_v34  ;;  %v34_v43 = vunpack.c.l.bf16 %v26_v35  ;;  %v381_v46 = vsel %vm18_vm0, %v83_v31, 0.0  ;;  %v385_v47 = vsel %vm18_vm0, %v85_v32, 0.0  ;;  %s259_s12 = sshll.u32 %s315_s1, 4  ;;  %s260_s12 = int_to_ptr.vmem [resolvable:$true] %s259_s12 }
   0xd   :  { %v274_v44 = vpop.eup %273  ;;  %v51_v45 = vadd.f32 1.0, %v272_v40  ;;  %281 = vtanh.f32 %v40_v39  ;;  %v389_v50 = vsel %vm18_vm0, %v87_v36, 0.0  ;;  %v396_v57 = vsel %vm18_vm0, %v84_v37, 0.0 }
   0xe   :  { %v276_v48 = vpop.eup %275  ;;  %v53_v49 = vadd.f32 1.0, %v274_v44  ;;  %v41_v51 = vmul.f32 0.5, %v33_v42  ;;  %v42_v53 = vmul.f32 0.5, %v34_v43  ;;  %v86_v58 = vcvt.s32.f32 %v78_v38 }
   0xf   :  { %v278_v54 = vpop.eup %277  ;;  %v59_v55 = vmul.f32 0.5, %v51_v45  ;;  %v55_v56 = vadd.f32 1.0, %v276_v48  ;;  %v88_v61 = vcvt.s32.f32 %v80_v41  ;;  %v81_v2 = vunpack.c.0.s8 %v73_v52 }
  0x10   :  { %v61_v59 = vmul.f32 0.5, %v53_v49  ;;  %v52_v60 = vadd.f32 1.0, %v278_v54  ;;  %283 = vtanh.f32 %v41_v51  ;;  %v102_v11 = vsel %vm18_vm0, %v86_v58, 0.0 }
  0x11   :  { %v280_v63 = vpop.eup %279  ;;  %v91_v0 = vsel %vm18_vm0, %v59_v55, 0.0  ;;  %v63_v1 = vmul.f32 0.5, %v55_v56  ;;  %285 = vtanh.f32 %v42_v53  ;;  %v82_v12 = vunpack.c.0.s8 %v74_v62 }
  0x12   :  { %v176_v3 = vadd.f32 %v381_v46, %v91_v0  ;;  %v93_v4 = vsel %vm18_vm0, %v61_v59, 0.0  ;;  %v60_v5 = vmul.f32 0.5, %v52_v60  ;;  %v54_v6 = vadd.f32 1.0, %v280_v63 }
  0x13   :  { %v282_v7 = vpop.eup %281  ;;  %v178_v9 = vadd.f32 %v385_v47, %v93_v4  ;;  %v95_v10 = vsel %vm18_vm0, %v63_v1, 0.0  ;;  %v104_v23 = vsel %vm18_vm0, %v88_v61, 0.0  ;;  %v89_v29 = vcvt.s32.f32 %v81_v2 }
  0x14   :  { %v184_v13 = vsel %vm115_vm1, %v176_v3, 0.0  ;;  %v180_v14 = vadd.f32 %v389_v50, %v95_v10  ;;  %v92_v15 = vsel %vm18_vm0, %v60_v5, 0.0  ;;  %v62_v16 = vmul.f32 0.5, %v54_v6 }
  0x15   :  { %185 = vadd.xlane.f32.xlu0 %v184_v13  ;;  %v190_v17 = vsel %vm115_vm1, %v178_v9, 0.0  ;;  %v56_v18 = vadd.f32 1.0, %v282_v7  ;;  %v177_v21 = vadd.f32 %v396_v57, %v92_v15  ;;  %v90_v31 = vcvt.s32.f32 %v82_v12 }
  0x16   :  { %v284_v19 = vpop.eup %283  ;;  %191 = vadd.xlane.f32.xlu1 %v190_v17  ;;  %v196_v20 = vsel %vm115_vm1, %v180_v14, 0.0  ;;  %v94_v22 = vsel %vm18_vm0, %v62_v16, 0.0  ;;  %v105_v39 = vsel %vm18_vm0, %v89_v29, 0.0  ;;  %v107_v45 = vmul.f32 %v381_v46, %v91_v0 }
  0x17   :  { %v286_v24 = vpop.eup %285  ;;  %197 = vadd.xlane.f32.xlu2 %v196_v20  ;;  %v179_v26 = vadd.f32 %v102_v11, %v94_v22  ;;  %v64_v27 = vmul.f32 0.5, %v56_v18  ;;  %v57_v28 = vadd.f32 1.0, %v284_v19  ;;  %v187_v34 = vsel %vm115_vm1, %v177_v21, 0.0 }
  0x18   :  { %v58_v30 = vadd.f32 1.0, %v286_v24  ;;  %v106_v42 = vsel %vm18_vm0, %v90_v31, 0.0  ;;  %v116_v51 = vsel %vm115_vm1, %v107_v45, 0.0  ;;  %v108_v52 = vmul.f32 %v396_v57, %v92_v15 }
  0x19   :  { %v96_v32 = vsel %vm18_vm0, %v64_v27, 0.0  ;;  %v65_v33 = vmul.f32 0.5, %v57_v28  ;;  %v193_v37 = vsel %vm115_vm1, %v179_v26, 0.0  ;;  %v109_v25 = vmul.f32 %v385_v47, %v93_v4 }
  0x1a   :  { %v181_v35 = vadd.f32 %v104_v23, %v96_v32  ;;  %v66_v36 = vmul.f32 0.5, %v58_v30  ;;  %v110_v53 = vmul.f32 %v102_v11, %v94_v22  ;;  %v119_v54 = vsel %vm115_vm1, %v108_v52, 0.0 }
  0x1b   :  { %v97_v38 = vsel %vm18_vm0, %v65_v33, 0.0  ;;  %v122_v55 = vsel %vm115_vm1, %v109_v25, 0.0  ;;  %v111_v56 = vmul.f32 %v389_v50, %v95_v10  ;;  %v112_v58 = vmul.f32 %v104_v23, %v96_v32 }
  0x1c   :  { %v199_v40 = vsel %vm115_vm1, %v181_v35, 0.0  ;;  %v98_v41 = vsel %vm18_vm0, %v66_v36, 0.0  ;;  %v182_v43 = vadd.f32 %v105_v39, %v97_v38  ;;  %v125_v46 = vsel %vm115_vm1, %v110_v53, 0.0 }
  0x1d   :  { %188 = vadd.xlane.f32.xlu0 %v187_v34  ;;  %v183_v44 = vadd.f32 %v106_v42, %v98_v41  ;;  %v113_v59 = vmul.f32 %v105_v39, %v97_v38  ;;  %v128_v60 = vsel %vm115_vm1, %v111_v56, 0.0  ;;  %v131_v57 = vsel %vm115_vm1, %v112_v58, 0.0 }
  0x1e   :  { %194 = vadd.xlane.f32.xlu1 %v193_v37  ;;  %v202_v48 = vsel %vm115_vm1, %v182_v43, 0.0  ;;  %v114_v61 = vmul.f32 %v106_v42, %v98_v41  ;;  %vm156_vm2 = vcmask 1041409   ;;  %vm158_vm3 = vcmask 1042434  }
  0x1f   :  { %200 = vadd.xlane.f32.xlu2 %v199_v40  ;;  %v205_v49 = vsel %vm115_vm1, %v183_v44, 0.0  ;;  %v134_v47 = vsel %vm115_vm1, %v113_v59, 0.0  ;;  %vm160_vm4 = vcmask 1043459   ;;  %vm162_vm5 = vcmask 1044484  }
  0x20   :  { %v137_v62 = vsel %vm115_vm1, %v114_v61, 0.0  ;;  %vm164_vm6 = vcmask 1045509   ;;  %vm166_vm7 = vcmask 1046534   ;;  %vm168_vm8 = vcmask 1047559  }
  0x21   :  { %vm171_vm9 = vcmask 15360  }
  0x25   :  { %203 = vadd.xlane.f32.xlu0 %v202_v48 }
  0x26   :  { %206 = vadd.xlane.f32.xlu1 %v205_v49 }
  0x27   :  { %117 = vadd.xlane.f32.xlu2 %v116_v51 }
  0x2d   :  { %120 = vadd.xlane.f32.xlu0 %v119_v54 }
  0x2e   :  { %123 = vadd.xlane.f32.xlu1 %v122_v55 }
  0x2f   :  { %126 = vadd.xlane.f32.xlu2 %v125_v46 }
  0x35   :  { %129 = vadd.xlane.f32.xlu0 %v128_v60 }
  0x36   :  { %132 = vadd.xlane.f32.xlu1 %v131_v57 }
  0x37   :  { %135 = vadd.xlane.f32.xlu2 %v134_v47 }
  0x3d   :  { %138 = vadd.xlane.f32.xlu0 %v137_v62 }
  0x88   :  { %v186_v63 = vpop.xlane.xlu0 %185 }
  0x89   :  { %v192_v0 = vpop.xlane.xlu1 %191  ;;  %v216_v2 = vperm.slane %v186_v63, %v346_v8 }
  0x8a   :  { %v198_v1 = vpop.xlane.xlu2 %197  ;;  %v218_v5 = vperm.slane %v192_v0, %v346_v8 }
  0x8b   :  { %v220_v11 = vperm.slane %v198_v1, %v346_v8 }
  0x90   :  { %v189_v50 = vpop.xlane.xlu0 %188 }
  0x91   :  { %v217_v3 = vperm.slane %v189_v50, %v346_v8  ;;  %v195_v4 = vpop.xlane.xlu1 %194 }
  0x92   :  { %v219_v6 = vperm.slane %v195_v4, %v346_v8  ;;  %v201_v7 = vpop.xlane.xlu2 %200 }
  0x93   :  { %v224_v9 = vsel %vm156_vm2, %v217_v3, %v216_v2  ;;  %v221_v13 = vperm.slane %v201_v7, %v346_v8 }
  0x94   :  { %v225_v10 = vsel %vm158_vm3, %v218_v5, %v224_v9 }
  0x95   :  { %v226_v12 = vsel %vm160_vm4, %v219_v6, %v225_v10 }
  0x96   :  { %v227_v14 = vsel %vm162_vm5, %v220_v11, %v226_v12 }
  0x97   :  { %v228_v18 = vsel %vm164_vm6, %v221_v13, %v227_v14 }
  0x98   :  { %v204_v15 = vpop.xlane.xlu0 %203 }
  0x99   :  { %v222_v16 = vperm.slane %v204_v15, %v346_v8  ;;  %v207_v17 = vpop.xlane.xlu1 %206 }
  0x9a   :  { %v223_v19 = vperm.slane %v207_v17, %v346_v8  ;;  %v118_v20 = vpop.xlane.xlu2 %117 }
  0x9b   :  { %v229_v21 = vsel %vm166_vm7, %v222_v16, %v228_v18  ;;  %v148_v26 = vperm.slane %v118_v20, %v346_v8 }
  0x9c   :  { %v230_v22 = vsel %vm168_vm8, %v223_v19, %v229_v21 }
  0x9d   :  { %v232_v23 = vsel %vm171_vm9, %v230_v22, 0.0 }
  0x9e   :  { %233 = vadd.xlane.f32.xlu1 %v232_v23 }
  0xa0   :  { %v121_v24 = vpop.xlane.xlu0 %120 }
  0xa1   :  { %v149_v27 = vperm.slane %v121_v24, %v346_v8  ;;  %v124_v28 = vpop.xlane.xlu1 %123 }
  0xa2   :  { %v127_v29 = vpop.xlane.xlu2 %126  ;;  %v150_v30 = vperm.slane %v124_v28, %v346_v8 }
  0xa3   :  { %v157_v31 = vsel %vm156_vm2, %v149_v27, %v148_v26  ;;  %v151_v32 = vperm.slane %v127_v29, %v346_v8 }
  0xa4   :  { %v159_v33 = vsel %vm158_vm3, %v150_v30, %v157_v31 }
  0xa5   :  { %v161_v37 = vsel %vm160_vm4, %v151_v32, %v159_v33 }
  0xa8   :  { %v130_v34 = vpop.xlane.xlu0 %129 }
  0xa9   :  { %v152_v35 = vperm.slane %v130_v34, %v346_v8  ;;  %v133_v36 = vpop.xlane.xlu1 %132 }
  0xaa   :  { %v153_v38 = vperm.slane %v133_v36, %v346_v8  ;;  %v136_v39 = vpop.xlane.xlu2 %135 }
  0xab   :  { %v163_v40 = vsel %vm162_vm5, %v152_v35, %v161_v37  ;;  %v154_v41 = vperm.slane %v136_v39, %v346_v8 }
  0xac   :  { %v165_v42 = vsel %vm164_vm6, %v153_v38, %v163_v40 }
  0xad   :  { %v167_v45 = vsel %vm166_vm7, %v154_v41, %v165_v42 }
  0xb0   :  { %v139_v43 = vpop.xlane.xlu0 %138 }
  0xb1   :  { %v155_v44 = vperm.slane %v139_v43, %v346_v8 }
  0xb3   :  { %v169_v48 = vsel %vm168_vm8, %v155_v44, %v167_v45 }
  0xb4   :  { %v172_v49 = vsel %vm171_vm9, %v169_v48, 0.0 }
  0xb5   :  { %173 = vadd.xlane.f32.xlu2 %v172_v49 }
 0x111   :  { %v234_v51 = vpop.xlane.xlu1 %233 }
 0x112   :  { %v235_v52 = vadd.f32 1e-05, %v234_v51 }
 0x114   :  { %287 = vrcp.f32 %v235_v52  ;;  %v248_v56 = vand.u32 2147483648, %v235_v52  ;;  %vm242_vm11 = vweird.f32 %v235_v52  ;;  %v246_v58 = vand.u32 2147483647, %v235_v52 }
 0x116   :  { %v249_v57 = vor.u32 1.1754944e-38, %v248_v56  ;;  %vm247_vm13 = vcmp.eq.f32.partialorder %v246_v58, 8.507059e+37 }
 0x11a   :  { %v288_v25 = vpop.eup %287 }
 0x11b   :  { %v238_v53 = vmul.f32 %v288_v25, %v235_v52  ;;  %vm243_vm10 = vweird.f32 %v288_v25 }
 0x11c   :  { %vm244_vm12 = vmor %vm242_vm11, %vm243_vm10 }
 0x11d   :  { %v239_v54 = vsub.f32 1.0, %v238_v53 }
 0x11f   :  { %v240_v55 = vmul.f32 %v288_v25, %v239_v54 }
 0x121   :  { %v241_v46 = vadd.f32 %v288_v25, %v240_v55 }
 0x123   :  { %v245_v59 = vsel %vm244_vm12, %v288_v25, %v241_v46 }
 0x124   :  { %v250_v61 = vsel %vm247_vm13, %v249_v57, %v245_v59 }
 0x128   :  { %v174_v8 = vpop.xlane.xlu2 %173 }
 0x129   :  { %v175_v60 = vadd.f32 1e-05, %v174_v8 }
 0x12b   :  { %v236_v47 = vmul.f32 2.0, %v175_v60 }
 0x12d   :  { %v251_v62 = vmul.f32 %v250_v61, %v236_v47 }
 0x12f   :  { %v252_v63 = vsub.f32 1.0, %v251_v62 }
 0x131   :  { %253 = vst [vmem:[#allocation2] sm:$0xff] %v252_v63 }
 0x132   :  { %264 = dma.vmem_to_hbm [thread:$0]  %s260_s12, 128, %s262_s15, [#allocation3]  }
 0x133   :  { %313 = dma.done.wait [#allocation3], 128  }
 0x134   :  { %314 = vsyncadd [#allocation3], 4294967168 }
 0x135   :  { %269 = vsyncpa [#allocation3], 1 }

</bundles_post_ra>
